<compile_context>
chip_gen: v7x
topology: tpu7x:2x2x1
jax: 0.10.0
libtpu: 0.0.40
codegen_flags: <defaults>
</compile_context>

<pallas_src>
import jax
import jax.numpy as jnp
from jax.experimental import pallas as pl
from jax.experimental.pallas import tpu as pltpu

# ---- static config (small synthetic shapes) ----
B, CIN, H, W = 2, 4, 16, 16          # input (NCHW): (2, 4, 16, 16)
CMID = 8                              # backbone output channels
NC = 3                                # classes
NA = 3                                # anchors per level
NO = NC + 5                           # outputs per anchor (= 8)
NAO = NA * NO                         # detect channels (= 24)
STRIDE = 8.0                          # detect layer stride
EPS = 1e-3                            # BatchNorm eps (YOLOv7 default)
HW = H * W                            # 256
M = B * HW                            # 512 -> lane axis of every intermediate
KK = 9 * CIN                          # im2col contraction dim (= 36)
TM = 256                              # M tile per grid step (multiple of 128)
W_SHIFT = 4                           # log2(W)

assert (W & (W - 1)) == 0 and (HW & (HW - 1)) == 0 and (1 << W_SHIFT) == W
assert M % TM == 0 and TM % 128 == 0


# ---- fused kernel: conv+BN+SiLU -> 1x1 conv -> sigmoid -> YOLO decode ------
def fused_kernel(xcols_ref, wf_ref, bf_ref, wd_ref, bd_ref, coef_ref, out_ref):
    # xcols_ref: (KK, TM)    im2col'd padded input, M (=B*HW) on the lane axis
    # wf_ref:    (CMID, KK)  conv weight with BN scale folded in (transposed)
    # bf_ref:    (CMID, 1)   folded BN shift (conv bias)
    # wd_ref:    (NAO, CMID) detect 1x1-conv weight (transposed)
    # bd_ref:    (NAO, 1)    detect bias
    # coef_ref:  (NAO, 8)    per-row decode coefficients [c0, c1, c2, rx, ry, 0,0,0]
    # out_ref:   (NAO, TM)   decoded predictions, lane-dense along M
    h = jnp.dot(wf_ref[...], xcols_ref[...],
                preferred_element_type=jnp.float32) + bf_ref[...]
    h = h * jax.nn.sigmoid(h)                                   # SiLU, (CMID, TM)

    p = jnp.dot(wd_ref[...], h,
                preferred_element_type=jnp.float32) + bd_ref[...]
    y = jax.nn.sigmoid(p)                                       # (NAO, TM)

    coef = coef_ref[...]
    c0 = coef[:, 0:1]          # -0.5*STRIDE on xy rows, 0 elsewhere
    c1 = coef[:, 1:2]          # 2*STRIDE on xy, 0 on wh, 1 elsewhere
    c2 = coef[:, 2:3]          # 4*anchor_grid on wh rows, 0 elsewhere
    rx = coef[:, 3:4]          # 1 on the x row, 0 elsewhere
    ry = coef[:, 4:5]          # 1 on the y row, 0 elsewhere

    # grid x/y generated in-kernel from the global column index (no HBM slab).
    col = (jax.lax.broadcasted_iota(jnp.int32, (1, TM), 1)
           + pl.program_id(0) * TM)                             # global m index
    pos = jnp.bitwise_and(col, HW - 1)                          # m % HW
    gx = jnp.bitwise_and(pos, W - 1).astype(jnp.float32)        # pos % W
    gy = jnp.right_shift(pos, W_SHIFT).astype(jnp.float32)      # pos // W

    g = rx * gx + ry * gy                                       # (NAO, TM)
    out_ref[...] = (g * STRIDE + c0 + c1 * y + c2 * (y * y)).astype(out_ref.dtype)


# -------------------- wrapper --------------------
def traced_model_forward(x_nchw, params):
    """x_nchw: (B, CIN, H, W) float32 -> (B, NA*H*W, NO) decoded predictions."""
    # im2col glue (transposed): (KK, M), row order (ky, kx, cin), cols b*HW+y*W+x
    # TODO(synk): at real YOLOv7 shapes do im2col inside the kernel (9 shifted-
    # window matmuls) to avoid the 9x HBM read amplification of this slab.
    x = jnp.transpose(x_nchw, (0, 2, 3, 1))                          # NCHW -> NHWC
    xpad = jnp.pad(x, ((0, 0), (1, 1), (1, 1), (0, 0)))              # pad=1
    patches = jnp.stack(
        [xpad[:, ky:ky + H, kx:kx + W, :] for ky in range(3) for kx in range(3)],
        axis=0)                                                      # (9,B,H,W,CIN)
    xcols_t = jnp.transpose(patches, (0, 4, 1, 2, 3)).reshape(KK, M)

    # fold BN (eval mode) into the conv weight / bias (glue)
    bn_scale = params["bn_gamma"] / jnp.sqrt(params["bn_var"] + EPS)
    bn_shift = params["bn_beta"] - params["bn_mean"] * bn_scale
    wf_t = (params["w_conv"].reshape(KK, CMID) * bn_scale[None, :]).T   # (CMID, KK)
    bf = bn_shift.reshape(CMID, 1)

    wd_t = params["w_det"].T                                         # (NAO, CMID)
    bd = params["b_det"].reshape(NAO, 1)

    # per-row decode coefficients (rows are anchor-major: r = a*NO + k)
    # NOTE: params["anchors"] holds anchor_grid values in PIXELS (anchors*stride);
    # if a checkpoint supplies stride-normalized anchors, scale by STRIDE here.
    rows = jnp.arange(NAO)
    k = rows % NO
    a = rows // NO
    anc = params["anchors"]                                          # (NA, 2) pixels
    c0 = jnp.where(k < 2, -0.5 * STRIDE, 0.0)
    c1 = jnp.where(k < 2, 2.0 * STRIDE, jnp.where(k < 4, 0.0, 1.0))
    c2 = jnp.where(k == 2, 4.0 * anc[a, 0],
                   jnp.where(k == 3, 4.0 * anc[a, 1], 0.0))
    rx = (k == 0).astype(jnp.float32)
    ry = (k == 1).astype(jnp.float32)
    zero = jnp.zeros((NAO,), jnp.float32)
    coef = jnp.stack([c0, c1, c2, rx, ry, zero, zero, zero], axis=-1)  # (NAO, 8)

    flops = 2 * M * (KK * CMID + CMID * NAO) + 8 * M * NAO
    transcendentals = M * (CMID + NAO)                               # sigmoids
    bytes_accessed = 4 * (KK * M + CMID * KK + CMID + NAO * CMID + NAO
                          + NAO * 8 + NAO * M)

    out_t = pl.pallas_call(
        fused_kernel,
        out_shape=jax.ShapeDtypeStruct((NAO, M), jnp.float32),
        grid_spec=pltpu.PrefetchScalarGridSpec(
            num_scalar_prefetch=0,
            grid=(M // TM,),                               # parallel M tiles
            in_specs=[
                pl.BlockSpec((KK, TM), lambda i: (0, i)),
                pl.BlockSpec((CMID, KK), lambda i: (0, 0)),
                pl.BlockSpec((CMID, 1), lambda i: (0, 0)),
                pl.BlockSpec((NAO, CMID), lambda i: (0, 0)),
                pl.BlockSpec((NAO, 1), lambda i: (0, 0)),
                pl.BlockSpec((NAO, 8), lambda i: (0, 0)),
            ],
            out_specs=pl.BlockSpec((NAO, TM), lambda i: (0, i)),
        ),
        compiler_params=pltpu.CompilerParams(
            dimension_semantics=("parallel",)),            # 2nd TC on v7x gets a tile
        cost_estimate=pl.CostEstimate(flops=flops,
                                      transcendentals=transcendentals,
                                      bytes_accessed=bytes_accessed),
    )(xcols_t, wf_t, bf, wd_t, bd, coef)

    # out_t[a*NO+k, b*HW+pos] -> YOLO inference order (B, NA*HW, NO)  (glue)
    return (out_t.reshape(NA, NO, B, HW)
            .transpose(2, 0, 3, 1)
            .reshape(B, NA * HW, NO))


def init_params(key):
    k = jax.random.split(key, 6)
    return {
        "w_conv": 0.1 * jax.random.normal(k[0], (3, 3, CIN, CMID), jnp.float32),
        "bn_gamma": 1.0 + 0.05 * jax.random.normal(k[1], (CMID,), jnp.float32),
        "bn_beta": 0.05 * jax.random.normal(k[2], (CMID,), jnp.float32),
        "bn_mean": 0.1 * jax.random.normal(k[3], (CMID,), jnp.float32),
        "bn_var": jnp.abs(1.0 + 0.1 * jax.random.normal(k[4], (CMID,), jnp.float32)),
        "w_det": 0.1 * jax.random.normal(k[5], (CMID, NAO), jnp.float32),
        "b_det": jnp.zeros((NAO,), jnp.float32),
        # anchor_grid in pixels (anchors * stride), deterministic
        "anchors": jnp.array([[10.0, 13.0], [16.0, 30.0], [33.0, 23.0]],
                             dtype=jnp.float32),
    }
    # TODO(synk): the real TracedModel runs a full YOLOv7 backbone from a
    # traced checkpoint; only this representative Conv->BN->SiLU + Detect path
    # is reproduced.  At real YOLOv7 shapes: do im2col in-kernel, feed
    # 128/256-wide K/N MXU tiles, and re-derive tile sizes against v7x's
    # 64 MiB VMEM (set vmem_limit_bytes explicitly).


if __name__ == "__main__":
    key = jax.random.PRNGKey(0)
    kx, kp = jax.random.split(key)
    x = jax.random.normal(kx, (B, CIN, H, W), jnp.float32)   # NCHW like PyTorch
    params = init_params(kp)

    fwd = jax.jit(traced_model_forward)
    out = fwd(x, params)
    jax.block_until_ready(out)
    assert out.shape == (B, NA * H * W, NO)
    print("KERNEL_OK")
</pallas_src>

<mosaic_0001>
module attributes {stable_mosaic.version = 11 : i64} {
  func.func @fused_kernel(%arg0: i32, %arg1: memref<36x256xf32, #tpu.memory_space<vmem>>, %arg2: memref<8x36xf32, #tpu.memory_space<vmem>>, %arg3: memref<8x1xf32, #tpu.memory_space<vmem>>, %arg4: memref<24x8xf32, #tpu.memory_space<vmem>>, %arg5: memref<24x1xf32, #tpu.memory_space<vmem>>, %arg6: memref<24x8xf32, #tpu.memory_space<vmem>>, %arg7: memref<24x256xf32, #tpu.memory_space<vmem>>) attributes {dimension_semantics = [#tpu.dimension_semantics<parallel>], iteration_bounds = array<i64: 2>, scalar_prefetch = 0 : i64, scratch_operands = 0 : i64, tpu.core_type = #tpu.core_type<tc>, window_params = [{transform_indices = @transform_0, window_bounds = array<i64: 36, 256>}, {pipeline_mode = #tpu.pipeline_mode<synchronous>, transform_indices = @transform_1, window_bounds = array<i64: 8, 36>}, {pipeline_mode = #tpu.pipeline_mode<synchronous>, transform_indices = @transform_2, window_bounds = array<i64: 8, 1>}, {pipeline_mode = #tpu.pipeline_mode<synchronous>, transform_indices = @transform_3, window_bounds = array<i64: 24, 8>}, {pipeline_mode = #tpu.pipeline_mode<synchronous>, transform_indices = @transform_4, window_bounds = array<i64: 24, 1>}, {pipeline_mode = #tpu.pipeline_mode<synchronous>, transform_indices = @transform_5, window_bounds = array<i64: 24, 8>}, {transform_indices = @transform_6, window_bounds = array<i64: 24, 256>}]} {
    %c0 = arith.constant 0 : index
    %c0_0 = arith.constant 0 : index
    %0 = vector.load %arg2[%c0, %c0_0] : memref<8x36xf32, #tpu.memory_space<vmem>>, vector<8x36xf32>
    %c0_1 = arith.constant 0 : index
    %c0_2 = arith.constant 0 : index
    %1 = vector.load %arg1[%c0_1, %c0_2] : memref<36x256xf32, #tpu.memory_space<vmem>>, vector<36x256xf32>
    %cst = arith.constant dense<0.000000e+00> : vector<8x256xf32>
    %2 = tpu.matmul %0, %1, %cst {dimension_numbers = #tpu.dot_dimension_numbers<[1], [0], [0], [1], [0, 0, 1, 1], [], []>} : vector<8x36xf32>, vector<36x256xf32>, vector<8x256xf32> -> vector<8x256xf32>
    %c0_3 = arith.constant 0 : index
    %c0_4 = arith.constant 0 : index
    %3 = vector.load %arg3[%c0_3, %c0_4] : memref<8x1xf32, #tpu.memory_space<vmem>>, vector<8x1xf32>
    %4 = vector.broadcast %3 : vector<8x1xf32> to vector<8x256xf32>
    %5 = arith.addf %2, %4 : vector<8x256xf32>
    %6 = arith.negf %5 : vector<8x256xf32>
    %7 = math.exp %6 : vector<8x256xf32>
    %cst_5 = arith.constant 1.000000e+00 : f32
    %8 = vector.broadcast %cst_5 : f32 to vector<8x256xf32>
    %9 = arith.addf %8, %7 : vector<8x256xf32>
    %10 = arith.divf %8, %9 : vector<8x256xf32>
    %11 = arith.mulf %5, %10 : vector<8x256xf32>
    %c0_6 = arith.constant 0 : index
    %c0_7 = arith.constant 0 : index
    %12 = vector.load %arg4[%c0_6, %c0_7] : memref<24x8xf32, #tpu.memory_space<vmem>>, vector<24x8xf32>
    %cst_8 = arith.constant dense<0.000000e+00> : vector<24x256xf32>
    %13 = tpu.matmul %12, %11, %cst_8 {dimension_numbers = #tpu.dot_dimension_numbers<[1], [0], [0], [1], [0, 0, 1, 1], [], []>} : vector<24x8xf32>, vector<8x256xf32>, vector<24x256xf32> -> vector<24x256xf32>
    %c0_9 = arith.constant 0 : index
    %c0_10 = arith.constant 0 : index
    %14 = vector.load %arg5[%c0_9, %c0_10] : memref<24x1xf32, #tpu.memory_space<vmem>>, vector<24x1xf32>
    %15 = vector.broadcast %14 : vector<24x1xf32> to vector<24x256xf32>
    %16 = arith.addf %13, %15 : vector<24x256xf32>
    %17 = arith.negf %16 : vector<24x256xf32>
    %18 = math.exp %17 : vector<24x256xf32>
    %cst_11 = arith.constant 1.000000e+00 : f32
    %19 = vector.broadcast %cst_11 : f32 to vector<24x256xf32>
    %20 = arith.addf %19, %18 : vector<24x256xf32>
    %21 = arith.divf %19, %20 : vector<24x256xf32>
    %c0_12 = arith.constant 0 : index
    %c0_13 = arith.constant 0 : index
    %22 = vector.load %arg6[%c0_12, %c0_13] : memref<24x8xf32, #tpu.memory_space<vmem>>, vector<24x8xf32>
    %23 = vector.extract_strided_slice %22 {offsets = [0, 0], sizes = [24, 1], strides = [1, 1]} : vector<24x8xf32> to vector<24x1xf32>
    %24 = vector.extract_strided_slice %22 {offsets = [0, 1], sizes = [24, 1], strides = [1, 1]} : vector<24x8xf32> to vector<24x1xf32>
    %25 = vector.extract_strided_slice %22 {offsets = [0, 2], sizes = [24, 1], strides = [1, 1]} : vector<24x8xf32> to vector<24x1xf32>
    %26 = vector.extract_strided_slice %22 {offsets = [0, 3], sizes = [24, 1], strides = [1, 1]} : vector<24x8xf32> to vector<24x1xf32>
    %27 = vector.extract_strided_slice %22 {offsets = [0, 4], sizes = [24, 1], strides = [1, 1]} : vector<24x8xf32> to vector<24x1xf32>
    %28 = tpu.iota {dimensions = array<i32: 1>} : vector<1x256xi32>
    %c256_i32 = arith.constant 256 : i32
    %29 = arith.muli %arg0, %c256_i32 : i32
    %30 = vector.broadcast %29 : i32 to vector<1x256xi32>
    %31 = arith.addi %28, %30 : vector<1x256xi32>
    %c255_i32 = arith.constant 255 : i32
    %32 = vector.broadcast %c255_i32 : i32 to vector<1x256xi32>
    %33 = arith.andi %31, %32 : vector<1x256xi32>
    %c15_i32 = arith.constant 15 : i32
    %34 = vector.broadcast %c15_i32 : i32 to vector<1x256xi32>
    %35 = arith.andi %33, %34 : vector<1x256xi32>
    %36 = arith.sitofp %35 : vector<1x256xi32> to vector<1x256xf32>
    %c4_i32 = arith.constant 4 : i32
    %37 = vector.broadcast %c4_i32 : i32 to vector<1x256xi32>
    %38 = arith.shrsi %33, %37 : vector<1x256xi32>
    %39 = arith.sitofp %38 : vector<1x256xi32> to vector<1x256xf32>
    %40 = vector.broadcast %26 : vector<24x1xf32> to vector<24x256xf32>
    %41 = vector.broadcast %36 : vector<1x256xf32> to vector<24x256xf32>
    %42 = arith.mulf %40, %41 : vector<24x256xf32>
    %43 = vector.broadcast %27 : vector<24x1xf32> to vector<24x256xf32>
    %44 = vector.broadcast %39 : vector<1x256xf32> to vector<24x256xf32>
    %45 = arith.mulf %43, %44 : vector<24x256xf32>
    %46 = arith.addf %42, %45 : vector<24x256xf32>
    %cst_14 = arith.constant 8.000000e+00 : f32
    %47 = vector.broadcast %cst_14 : f32 to vector<24x256xf32>
    %48 = arith.mulf %46, %47 : vector<24x256xf32>
    %49 = vector.broadcast %23 : vector<24x1xf32> to vector<24x256xf32>
    %50 = arith.addf %48, %49 : vector<24x256xf32>
    %51 = vector.broadcast %24 : vector<24x1xf32> to vector<24x256xf32>
    %52 = arith.mulf %51, %21 : vector<24x256xf32>
    %53 = arith.addf %50, %52 : vector<24x256xf32>
    %54 = arith.mulf %21, %21 : vector<24x256xf32>
    %55 = vector.broadcast %25 : vector<24x1xf32> to vector<24x256xf32>
    %56 = arith.mulf %55, %54 : vector<24x256xf32>
    %57 = arith.addf %53, %56 : vector<24x256xf32>
    %c0_15 = arith.constant 0 : index
    %c0_16 = arith.constant 0 : index
    %58 = vector.load %arg7[%c0_15, %c0_16] : memref<24x256xf32, #tpu.memory_space<vmem>>, vector<24x256xf32>
    tpu.vector_store %arg7[%c0_15, %c0_16], %57 {strides = array<i32>} : memref<24x256xf32, #tpu.memory_space<vmem>>, vector<24x256xf32>,
    return
  }
  func.func @transform_0(%arg0: i32) -> (i32, i32) {
    %c0_i32 = arith.constant 0 : i32
    %c0_i32_0 = arith.constant 0 : i32
    return %c0_i32, %arg0 : i32, i32
  }
  func.func @transform_1(%arg0: i32) -> (i32, i32) {
    %c0_i32 = arith.constant 0 : i32
    %c0_i32_0 = arith.constant 0 : i32
    %c0_i32_1 = arith.constant 0 : i32
    return %c0_i32, %c0_i32_0 : i32, i32
  }
  func.func @transform_2(%arg0: i32) -> (i32, i32) {
    %c0_i32 = arith.constant 0 : i32
    %c0_i32_0 = arith.constant 0 : i32
    %c0_i32_1 = arith.constant 0 : i32
    return %c0_i32, %c0_i32_0 : i32, i32
  }
  func.func @transform_3(%arg0: i32) -> (i32, i32) {
    %c0_i32 = arith.constant 0 : i32
    %c0_i32_0 = arith.constant 0 : i32
    %c0_i32_1 = arith.constant 0 : i32
    return %c0_i32, %c0_i32_0 : i32, i32
  }
  func.func @transform_4(%arg0: i32) -> (i32, i32) {
    %c0_i32 = arith.constant 0 : i32
    %c0_i32_0 = arith.constant 0 : i32
    %c0_i32_1 = arith.constant 0 : i32
    return %c0_i32, %c0_i32_0 : i32, i32
  }
  func.func @transform_5(%arg0: i32) -> (i32, i32) {
    %c0_i32 = arith.constant 0 : i32
    %c0_i32_0 = arith.constant 0 : i32
    %c0_i32_1 = arith.constant 0 : i32
    return %c0_i32, %c0_i32_0 : i32, i32
  }
  func.func @transform_6(%arg0: i32) -> (i32, i32) {
    %c0_i32 = arith.constant 0 : i32
    %c0_i32_0 = arith.constant 0 : i32
    return %c0_i32, %arg0 : i32, i32
  }
}

</mosaic_0001>

<bundles_post_ra>
// kernel: traced_model_forward.1
= control target key start
LH: loop header
LB: loop body
LE: loop exit
PB: predicated region body
PF: predicated region fallthrough
CT: control target
= control target key end

     0   :  { %s969_s21 = smov 0   ;;  %s971_s22 = smov 0   ;;  %s1109_s0 = inlined_call_operand.vmem [shape: f32[36,512], index: 0, kind: input, shape index: {}]   ;;  %s1110_s1 = inlined_call_operand.vmem [shape: f32[8,36], index: 1, kind: input, shape index: {}]   ;;  %s1111_s2 = inlined_call_operand.vmem [shape: f32[8,1], index: 2, kind: input, shape index: {}]   ;;  %s1112_s3 = inlined_call_operand.vmem [shape: f32[24,8], index: 3, kind: input, shape index: {}]   ;;  %s1113_s4 = inlined_call_operand.vmem [shape: f32[24,1], index: 4, kind: input, shape index: {}]   ;;  %s1114_s5 = inlined_call_operand.vmem [shape: f32[24,8], index: 5, kind: input, shape index: {}]   ;;  %s1115_s6 = inlined_call_operand.vmem [shape: f32[24,512], index: 6, kind: output, shape index: {}]  }
   0x1   :  { %s973_s23 = smov 0  }
   0x2 LB: > { %s985_s24 = sadd.s32 4294967295, %s926_s23   ;;  %s988_s25 = sadd.s32 1, %s926_s23   ;;  %s926_s23 = sphi %s973_s23, %s1119_s23   ;;  %s922_s22 = sphi %s971_s22, %s1118_s22   ;;  %s918_s21 = sphi %s969_s21, %s1117_s21  }
   0x3   : > { %s20_s26 = ssub.s32 %s926_s23, %s988_s25  ;;  %s23_s27 = sadd.s32 1, %s922_s22 }
   0x4   : > { %p21_p0 = scmp.eq.s32.totalorder %s20_s26, 0  ;;  %p30_p1 = scmp.ne.s32.totalorder %s922_s22, %s918_s21 }
   0x5   : > { %p31_p2 = scmp.eq.s32.totalorder %s926_s23, 0  ;;  %p165_p3 = scmp.eq.s32.totalorder %s985_s24, 1 }
   0x6   : > { %s998_s28 = scalar_select %p21_p0, %s922_s22, %s23_s27  }
   0x7   : > { %p32_p4 = por %p31_p2, %p30_p1  ;;  %p1000_p5 = por %p165_p3, %p30_p1 }
   0x8   : > { %p794_p6 = scmp.ge.s32.totalorder %s926_s23, 2 }
   0xa   : > { %202 = sbr.rel (%p794_p6) target bundleno = 26 (0x1a), region = 36 }
  0x11   : > { %205 = sbr.rel (!%p32_p4) target bundleno = 26 (0x1a), region = 40  ;;  %s207_s30 = sand.u32 (%p32_p4), 1, %s922_s22  }
  0x12   : > { %s817_s7 = sshll.u32 (%p32_p4), %s926_s23, 4  ;;  %s827_s8 = smul.u32 (%p32_p4), 80, %s207_s30 }
  0x13   : > { %s212_s11 = scalar_lea.vmem (%p32_p4), %s1109_s0, %s817_s7 }
  0x14   : > { %v225_v0 = vld [vmem:[%s212_s11] sm:$0xff] (%p32_p4)  ;;  %v227_v1 = vld [vmem:[%s212_s11 + $0x8] sm:$0xff] (%p32_p4)  ;;  %s209_s12 = scalar_lea.vmem (%p32_p4), [#allocation2], %s827_s8 }
  0x15   : > { %v229_v2 = vld [vmem:[%s212_s11 + $0x20] sm:$0xff] (%p32_p4)  ;;  %v231_v3 = vld [vmem:[%s212_s11 + $0x28] sm:$0xff] (%p32_p4)  ;;  %226 = vst [vmem:[%s209_s12] sm:$0xff] (%p32_p4), %v225_v0  ;;  %228 = vst [vmem:[%s209_s12 + $0x8] sm:$0xff] (%p32_p4), %v227_v1 }
  0x16   : > { %v233_v4 = vld [vmem:[%s212_s11 + $0x40] sm:$0xff] (%p32_p4)  ;;  %v235_v5 = vld [vmem:[%s212_s11 + $0x48] sm:$0xff] (%p32_p4)  ;;  %230 = vst [vmem:[%s209_s12 + $0x10] sm:$0xff] (%p32_p4), %v229_v2  ;;  %232 = vst [vmem:[%s209_s12 + $0x18] sm:$0xff] (%p32_p4), %v231_v3 }
  0x17   : > { %234 = vst [vmem:[%s209_s12 + $0x20] sm:$0xff] (%p32_p4), %v233_v4  ;;  %236 = vst [vmem:[%s209_s12 + $0x28] sm:$0xff] (%p32_p4), %v235_v5  ;;  %v237_v6 = vld [vmem:[%s212_s11 + $0x60] sm:$0xff] (%p32_p4)  ;;  %v239_v7 = vld [vmem:[%s212_s11 + $0x68] sm:$0xff] (%p32_p4) }
  0x18   : > { %v241_v8 = vld [vmem:[%s212_s11 + $0x80] sm:$0xff]  ;;  %238 = vst [vmem:[%s209_s12 + $0x30] sm:$0xff] %v237_v6  ;;  %240 = vst [vmem:[%s209_s12 + $0x38] sm:$0xff] %v239_v7  ;;  %v243_v9 = vld [vmem:[%s212_s11 + $0x88] sm:$0xff] }
  0x19   : > { %242 = vst [vmem:[%s209_s12 + $0x40] sm:$0xff] %v241_v8  ;;  %244 = vst [vmem:[%s209_s12 + $0x48] sm:$0xff] %v243_v9 }
  0x1a PF: > { %p797_p7 = scmp.ge.s32.totalorder %s926_s23, 1  ;;  %p249_p8 = scmp.lt.s32.totalorder %s926_s23, 3 }
  0x1c   : > { %p250_p9 = pnand %p797_p7, %p249_p8 }
  0x1d   : > { %s256_s13 = sand.u32 (!%p250_p9), 1, %s918_s21   ;;  %v928_v10 = vmov (!%p250_p9), 0.0   ;;  %v929_v11 = vmov (!%p250_p9), 0   ;;  %v297_v12 = vld [vmem:[%s1111_s2] sm:$0xff] (!%p250_p9)  ;;  %vm307_vm0 = vcmask (!%p250_p9), 1043456   ;;  %vm303_vm1 = vcmask (!%p250_p9), 293888  }
  0x1e   : > { %253 = sbr.rel (%p250_p9) target bundleno = 556 (0x22c), region = 63  ;;  %378 = vmatprep.mubr.f32.mxu0 (!%p250_p9), %v928_v10  ;;  %860 = vset.pattern.permute.xlu0 (!%p250_p9), %v929_v11  ;;  %v402_v13 = vld [vmem:[%s1113_s4] sm:$0xff] (!%p250_p9)  ;;  %v403_v29 = vld [vmem:[%s1113_s4 + $0x8] sm:$0xff] (!%p250_p9)  ;;  %v930_v30 = vmov (!%p250_p9), 3   ;;  %v404_v32 = vld [vmem:[%s1113_s4 + $0x10] sm:$0xff] (!%p250_p9)  ;;  %v931_v33 = vmov (!%p250_p9), 4   ;;  %v552_v60 = vlaneseq (!%p250_p9) }
  0x1f   : > { %s828_s14 = smul.u32 (!%p250_p9), 80, %s256_s13  ;;  %300 = vperm.xlu0 (!%p250_p9), %860, %v297_v12   ;;  %494 = vmatprep.mubr.f32.mxu1 (!%p250_p9), %v928_v10  ;;  %v286_v28 = vld [vmem:[%s1110_s1] sm:$0xff] (!%p250_p9)  ;;  %v550_v34 = vld [vmem:[%s1114_s5 + $0x8] sm:$0xff] (!%p250_p9)  ;;  %v551_v35 = vld [vmem:[%s1114_s5 + $0x10] sm:$0xff] (!%p250_p9)  ;;  %v932_v36 = vmov (!%p250_p9), 1   ;;  %v933_v37 = vmov (!%p250_p9), 2  }
  0x20   : > { %861 = vset.pattern.permute.xlu1 (!%p250_p9), %v929_v11  ;;  %v549_v31 = vld [vmem:[%s1114_s5] sm:$0xff] (!%p250_p9)  ;;  %vm420_vm2 = vcmask (!%p250_p9), 64512   ;;  %v400_v54 = vld [vmem:[%s1112_s3 + $0x8] sm:$0xff] (!%p250_p9)  ;;  %v401_v55 = vld [vmem:[%s1112_s3 + $0x10] sm:$0xff] (!%p250_p9)  ;;  %v553_v61 = vand.u32 (!%p250_p9), 127, %v552_v60  ;;  %s812_s23 = sshll.u32 (!%p250_p9), %s985_s24, 8 }
  0x21   : > { %s258_s19 = scalar_lea.vmem (!%p250_p9), [#allocation2], %s828_s14  ;;  %412 = vperm.xlu1 (!%p250_p9), %861, %v403_v29   ;;  %v399_v53 = vld [vmem:[%s1112_s3] sm:$0xff] (!%p250_p9)  ;;  %v556_v1 = vstv (!%p250_p9), %s812_s23  ;;  %s829_s26 = smul.u32 (!%p250_p9), 48, %s256_s13 }
  0x22   : > { %v288_v14 = vld [vmem:[%s258_s19 + $0x8] sm:$0xff] (!%p250_p9)  ;;  %v290_v15 = vld [vmem:[%s258_s19 + $0x18] sm:$0xff] (!%p250_p9)  ;;  %v287_v16 = vld [vmem:[%s258_s19] sm:$0xff] (!%p250_p9)  ;;  %v554_v0 = vadd.s32 (!%p250_p9), 128, %v553_v61  ;;  %v557_v6 = vadd.s32 (!%p250_p9), %v556_v1, %v553_v61 }
  0x23   : > { %v819_v17 = vpack.c.bf16 (!%p250_p9), %v290_v15, %v288_v14  ;;  %v289_v18 = vld [vmem:[%s258_s19 + $0x10] sm:$0xff] (!%p250_p9)  ;;  %v292_v19 = vld [vmem:[%s258_s19 + $0x28] sm:$0xff] (!%p250_p9)  ;;  %v294_v20 = vld [vmem:[%s258_s19 + $0x38] sm:$0xff] (!%p250_p9)  ;;  %407 = vperm.xlu0 (!%p250_p9), %860, %v402_v13   ;;  %s1077_s21 = scalar_lea.vmem (!%p250_p9), [#allocation3], %s829_s26 }
  0x24   : > { %v821_v21 = vpack.c.bf16 (!%p250_p9), %v289_v18, %v287_v16  ;;  %v823_v22 = vpack.c.bf16 (!%p250_p9), %v294_v20, %v292_v19  ;;  %v291_v23 = vld [vmem:[%s258_s19 + $0x20] sm:$0xff] (!%p250_p9)  ;;  %v293_v24 = vld [vmem:[%s258_s19 + $0x30] sm:$0xff] (!%p250_p9)  ;;  %v296_v26 = vld [vmem:[%s258_s19 + $0x48] sm:$0xf] (!%p250_p9)  ;;  %v558_v9 = vadd.s32 (!%p250_p9), %v556_v1, %v554_v0  ;;  %v559_v16 = vand.u32 (!%p250_p9), 255, %v557_v6 }
  0x25   : > { %820 = vmatprep.subr.bf16.mxu0 %v819_v17  ;;  %v825_v25 = vpack.c.bf16 %v293_v24, %v291_v23  ;;  %v295_v27 = vld [vmem:[%s258_s19 + $0x40] sm:$0xf]  ;;  %417 = vperm.xlu1 %861, %v404_v32   ;;  %s818_s13 = sshll.u32 (%p1000_p5), %s985_s24, 4 }
  0x26   : > { %822 = vmatpush1.bf16.msra.mxu0 %v821_v21  ;;  %v560_v18 = vand.u32 255, %v558_v9  ;;  %s707_s7 = scalar_lea.vmem (%p1000_p5), %s1115_s6, %s818_s13 }
  0x27   : > { %824 = vmatprep.subr.bf16.mxu0 %v823_v22  ;;  %862 = vset.pattern.permute.xlu0 %v930_v30 }
  0x28   : > { %571 = vperm.xlu0 %862, %v549_v31   ;;  %v562_v29 = vand.u32 15, %v560_v18 }
  0x29   : > { %863 = vset.pattern.permute.xlu1 %v930_v30  ;;  %v566_v30 = vshra.s32 %v560_v18, 4 }
  0x2a   : > { %826 = vmatpush1.bf16.msra.mxu0 %v825_v25  ;;  %576 = vperm.xlu1 %863, %v550_v34  }
  0x2b   : > { %798 = vmatprep.subr.msk.mxu0 %vm307_vm0, %v296_v26  ;;  %v561_v26 = vand.u32 15, %v559_v16 }
  0x2c   : > { %864 = vset.pattern.permute.xlu0 %v931_v33 }
  0x2d   : > { %591 = vperm.xlu0 %864, %v549_v31  }
  0x2e   : > { %799 = vmatpush1.msk.msra.mxu0 %vm307_vm0, %v295_v27  ;;  %581 = vperm.xlu1 %863, %v551_v35   ;;  %v565_v27 = vshra.s32 %v559_v16, 4 }
  0x2f   : > { %800 = vmatmul.mubr.msk.f32.vlgmr.msra.gmra.mrb[0].mxu0 %vm303_vm1, %v286_v28 }
  0x31   : > { %866 = vset.pattern.permute.xlu0 %v929_v11 }
  0x32   : > { %621 = vperm.xlu0 %866, %v549_v31   ;;  %865 = vset.pattern.permute.xlu1 %v931_v33  ;;  %v563_v33 = vcvt.s32.f32 %v561_v26 }
  0x33   : > { %595 = vperm.xlu1 %865, %v550_v34  }
  0x36   : > { %868 = vset.pattern.permute.xlu0 %v932_v36 }
  0x37   : > { %639 = vperm.xlu0 %868, %v549_v31   ;;  %599 = vperm.xlu1 %865, %v551_v35  }
  0x3b   : > { %870 = vset.pattern.permute.xlu0 %v933_v37  ;;  %867 = vset.pattern.permute.xlu1 %v929_v11 }
  0x3c   : > { %669 = vperm.xlu0 %870, %v549_v31   ;;  %625 = vperm.xlu1 %867, %v550_v34  }
  0x40   : > { %629 = vperm.xlu1 %867, %v551_v35  }
  0x44   : > { %869 = vset.pattern.permute.xlu1 %v932_v36  ;;  %v564_v36 = vcvt.s32.f32 %v562_v29 }
  0x45   : > { %643 = vperm.xlu1 %869, %v550_v34  }
  0x49   : > { %647 = vperm.xlu1 %869, %v551_v35  }
  0x4d   : > { %871 = vset.pattern.permute.xlu1 %v933_v37  ;;  %v568_v37 = vcvt.s32.f32 %v566_v30 }
  0x4e   : > { %673 = vperm.xlu1 %871, %v550_v34   ;;  %v567_v34 = vcvt.s32.f32 %v565_v27 }
  0x52   : > { %677 = vperm.xlu1 %871, %v551_v35  }
  0x9e   : > { %v301_v38 = vpop.permute.xlu0 %300 }
  0xa0   : > { %v413_v56 = vpop.permute.xlu1 %412 }
  0xa2   : > { %v408_v63 = vpop.permute.xlu0 %407 }
  0xa4   : > { %v418_v57 = vpop.permute.xlu1 %417 }
  0xa7   : > { %v572_v12 = vpop.permute.xlu0 %571 }
  0xa9   : > { %v1052_v58 = vpop.permute.xlu1 %576 }
  0xac   : > { %v592_v25 = vpop.permute.xlu0 %591 }
  0xad   : > { %v1054_v59 = vpop.permute.xlu1 %581 }
  0xae   : > { %v588_v61 = vmul.f32 %v1054_v59, %v563_v33  ;;  %v589_v0 = vmul.f32 %v1054_v59, %v564_v36 }
  0xb2   : > { %v1057_v62 = vpop.permute.xlu1 %595 }
  0xb6   : > { %v1059_v7 = vpop.permute.xlu1 %599 }
  0xb7   : > { %v606_v1 = vmul.f32 %v1059_v7, %v567_v34 }
  0xbb   : > { %v1061_v23 = vpop.permute.xlu1 %625 }
 0x102   : > { %v380_v39 = vpop.f32.mrb[0].mxu0 }
 0x103   : > { %v381_v40 = vadd.f32 %v380_v39, %v301_v38  ;;  %v382_v41 = vpop.f32.mrb[1].mxu0  ;;  %v1063_v39 = vpop.permute.xlu1 %629 }
 0x104   : > { %v383_v42 = vadd.f32 %v382_v41, %v301_v38 }
 0x105   : > { %v801_v43 = vmul.f32 -1.442695, %v381_v40 }
 0x106   : > { %v802_v44 = vmul.f32 -1.442695, %v383_v42 }
 0x107   : > { %872 = vpow2.f32 %v801_v43  ;;  %v602_v43 = vmul.f32 %v592_v25, %v567_v34 }
 0x108   : > { %874 = vpow2.f32 %v802_v44  ;;  %v585_v44 = vmul.f32 %v572_v12, %v564_v36 }
 0x111   : > { %v873_v45 = vpop.eup %872 }
 0x112   : > { %v875_v46 = vpop.eup %874  ;;  %v391_v47 = vadd.f32 1.0, %v873_v45  ;;  %v603_v45 = vmul.f32 %v592_v25, %v568_v37 }
 0x113   : > { %v392_v48 = vadd.f32 1.0, %v875_v46 }
 0x114   : > { %876 = vrcp.f32 %v391_v47 }
 0x115   : > { %878 = vrcp.f32 %v392_v48 }
 0x11e   : > { %v877_v49 = vpop.eup %876 }
 0x11f   : > { %v879_v50 = vpop.eup %878  ;;  %v397_v52 = vmul.f32 %v877_v49, %v381_v40  ;;  %v622_v40 = vpop.permute.xlu0 %621 }
 0x120   : > { %v398_v51 = vmul.f32 %v879_v50, %v383_v42  ;;  %v584_v42 = vmul.f32 %v572_v12, %v563_v33  ;;  %v644_v49 = vpop.permute.xlu1 %643  ;;  %v586_v50 = vmul.f32 %v1052_v58, %v563_v33 }
 0x122   : > { %430 = vmatprep.subr.mxu1 %v398_v51  ;;  %v604_v51 = vmul.f32 %v1057_v62, %v567_v34 }
 0x123   : > { %431 = vmatpush1.msra.mxu1 %v397_v52 }
 0x124   : > { %803 = vmatmul.mubr.msk.f32.vlgmr.msra.gmra.mrb[0].mxu1 %vm420_vm2, %v399_v53  ;;  %v608_v53 = vadd.f32 %v602_v43, %v584_v42 }
 0x125   : > { %500 = vmatprep.mubr.f32.mxu1 %v928_v10 }
 0x128   : > { %804 = vmatmul.mubr.msk.f32.gmra.mrb[2].mxu1 %vm420_vm2, %v400_v54  ;;  %v587_v54 = vmul.f32 %v1052_v58, %v564_v36 }
 0x129   : > { %506 = vmatprep.mubr.f32.mxu1 %v928_v10 }
 0x12c   : > { %805 = vmatmul.mubr.msk.f32.gmra.mrb[4].mxu1 %vm420_vm2, %v401_v55  ;;  %v605_v55 = vmul.f32 %v1057_v62, %v568_v37 }
 0x12e   : > { %v611_v62 = vadd.f32 %v605_v55, %v587_v54 }
 0x130   : > { %v617_v16 = vmul.f32 8.0, %v611_v62 }
 0x132   : > { %v635_v34 = vadd.f32 %v1061_v23, %v617_v16 }
 0x1f7   : > { %v496_v2 = vpop.f32.mrb[0].mxu1 }
 0x1f8   : > { %v497_v3 = vadd.f32 %v496_v2, %v408_v63  ;;  %v498_v4 = vpop.f32.mrb[1].mxu1  ;;  %v607_v2 = vmul.f32 %v1059_v7, %v568_v37 }
 0x1f9   : > { %v499_v5 = vadd.f32 %v498_v4, %v408_v63  ;;  %v610_v4 = vadd.f32 %v604_v51, %v586_v50 }
 0x1fa   : > { %v806_v8 = vmul.f32 -1.442695, %v497_v3 }
 0x1fb   : > { %v807_v10 = vmul.f32 -1.442695, %v499_v5  ;;  %v502_v11 = vpop.f32.mrb[2].mxu1  ;;  %v614_v5 = vmul.f32 8.0, %v608_v53 }
 0x1fc   : > { %880 = vpow2.f32 %v806_v8  ;;  %v503_v13 = vadd.f32 %v502_v11, %v413_v56  ;;  %v504_v14 = vpop.f32.mrb[3].mxu1  ;;  %v648_v8 = vpop.permute.xlu1 %647  ;;  %v613_v11 = vadd.f32 %v607_v2, %v589_v0 }
 0x1fd   : > { %882 = vpow2.f32 %v807_v10  ;;  %v505_v15 = vadd.f32 %v504_v14, %v413_v56  ;;  %v609_v56 = vadd.f32 %v603_v45, %v585_v44  ;;  %v612_v10 = vadd.f32 %v606_v1, %v588_v61 }
 0x1fe   : > { %v808_v17 = vmul.f32 -1.442695, %v503_v13  ;;  %v616_v13 = vmul.f32 8.0, %v610_v4  ;;  %v632_v14 = vadd.f32 %v622_v40, %v614_v5  ;;  %v619_v25 = vmul.f32 8.0, %v613_v11 }
 0x1ff   : > { %v809_v19 = vmul.f32 -1.442695, %v505_v15  ;;  %v508_v20 = vpop.f32.mrb[4].mxu1  ;;  %v615_v6 = vmul.f32 8.0, %v609_v56 }
 0x200   : > { %884 = vpow2.f32 %v808_v17  ;;  %v509_v21 = vadd.f32 %v508_v20, %v418_v57  ;;  %v510_v22 = vpop.f32.mrb[5].mxu1  ;;  %v634_v30 = vadd.f32 %v1061_v23, %v616_v13 }
 0x201   : > { %886 = vpow2.f32 %v809_v19  ;;  %v511_v24 = vadd.f32 %v510_v22, %v418_v57  ;;  %v640_v57 = vpop.permute.xlu0 %639  ;;  %v633_v17 = vadd.f32 %v622_v40, %v615_v6 }
 0x202   : > { %v810_v28 = vmul.f32 -1.442695, %v509_v21 }
 0x203   : > { %v811_v31 = vmul.f32 -1.442695, %v511_v24  ;;  %v618_v24 = vmul.f32 8.0, %v612_v10 }
 0x204   : > { %888 = vpow2.f32 %v810_v28  ;;  %v674_v28 = vpop.permute.xlu1 %673 }
 0x205   : > { %890 = vpow2.f32 %v811_v31  ;;  %v670_v12 = vpop.permute.xlu0 %669  ;;  %v636_v45 = vadd.f32 %v1063_v39, %v618_v24 }
 0x206   : > { %v881_v32 = vpop.eup %880 }
 0x207   : > { %v883_v35 = vpop.eup %882  ;;  %v531_v38 = vadd.f32 1.0, %v881_v32 }
 0x208   : > { %v532_v41 = vadd.f32 1.0, %v883_v35  ;;  %v678_v51 = vpop.permute.xlu1 %677 }
 0x209   : > { %892 = vrcp.f32 %v531_v38 }
 0x20a   : > { %v885_v46 = vpop.eup %884  ;;  %894 = vrcp.f32 %v532_v41 }
 0x20b   : > { %v887_v47 = vpop.eup %886  ;;  %v533_v48 = vadd.f32 1.0, %v885_v46 }
 0x20c   : > { %v534_v52 = vadd.f32 1.0, %v887_v47 }
 0x20d   : > { %896 = vrcp.f32 %v533_v48  ;;  %v637_v48 = vadd.f32 %v1063_v39, %v619_v25 }
 0x20e   : > { %v889_v60 = vpop.eup %888  ;;  %898 = vrcp.f32 %v534_v52 }
 0x20f   : > { %v891_v63 = vpop.eup %890  ;;  %v535_v3 = vadd.f32 1.0, %v889_v60 }
 0x210   : > { %v536_v58 = vadd.f32 1.0, %v891_v63 }
 0x211   : > { %900 = vrcp.f32 %v535_v3 }
 0x212   : > { %902 = vrcp.f32 %v536_v58 }
 0x213   : > { %v893_v9 = vpop.eup %892 }
 0x214   : > { %v895_v59 = vpop.eup %894  ;;  %v650_v15 = vmul.f32 %v893_v9, %v640_v57  ;;  %v662_v7 = vmul.f32 %v893_v9, %v893_v9 }
 0x215   : > { %v651_v18 = vmul.f32 %v895_v59, %v640_v57  ;;  %v663_v19 = vmul.f32 %v895_v59, %v895_v59 }
 0x216   : > { %v656_v20 = vadd.f32 %v650_v15, %v632_v14  ;;  %v680_v21 = vmul.f32 %v670_v12, %v662_v7 }
 0x217   : > { %v897_v22 = vpop.eup %896  ;;  %v657_v26 = vadd.f32 %v651_v18, %v633_v17  ;;  %v681_v27 = vmul.f32 %v670_v12, %v663_v19 }
 0x218   : > { %v899_v29 = vpop.eup %898  ;;  %v652_v31 = vmul.f32 %v897_v22, %v644_v49  ;;  %v686_v32 = vadd.f32 %v680_v21, %v656_v20  ;;  %v664_v33 = vmul.f32 %v897_v22, %v897_v22 }
 0x219   : > { %v653_v35 = vmul.f32 %v899_v29, %v644_v49  ;;  %v687_v36 = vadd.f32 %v681_v27, %v657_v26  ;;  %v665_v37 = vmul.f32 %v899_v29, %v899_v29 }
 0x21a   : > { %v658_v38 = vadd.f32 %v652_v31, %v634_v30  ;;  %692 = vst [vmem:[%s1077_s21] sm:$0xff] %v686_v32  ;;  %v682_v40 = vmul.f32 %v674_v28, %v664_v33 }
 0x21b   : > { %v901_v41 = vpop.eup %900  ;;  %v659_v42 = vadd.f32 %v653_v35, %v635_v34  ;;  %693 = vst [vmem:[%s1077_s21 + $0x8] sm:$0xff] %v687_v36  ;;  %v683_v43 = vmul.f32 %v674_v28, %v665_v37 }
 0x21c   : > { %v903_v44 = vpop.eup %902  ;;  %v654_v23 = vmul.f32 %v901_v41, %v648_v8  ;;  %v688_v46 = vadd.f32 %v682_v40, %v658_v38  ;;  %v666_v47 = vmul.f32 %v901_v41, %v901_v41 }
 0x21d   : > { %v655_v49 = vmul.f32 %v903_v44, %v648_v8  ;;  %v689_v50 = vadd.f32 %v683_v43, %v659_v42  ;;  %v667_v52 = vmul.f32 %v903_v44, %v903_v44  ;;  %704 = sbr.rel (!%p1000_p5) target bundleno = 556 (0x22c), region = 71 }
 0x21e   : > { %v660_v53 = vadd.f32 %v654_v23, %v636_v45  ;;  %694 = vst [vmem:[%s1077_s21 + $0x10] sm:$0xff] %v688_v46  ;;  %v684_v54 = vmul.f32 %v678_v51, %v666_v47 }
 0x21f   : > { %v661_v55 = vadd.f32 %v655_v49, %v637_v48  ;;  %695 = vst [vmem:[%s1077_s21 + $0x18] sm:$0xff] %v689_v50  ;;  %v685_v56 = vmul.f32 %v678_v51, %v667_v52 }
 0x220   : > { %v690_v57 = vadd.f32 %v684_v54, %v660_v53 }
 0x221   : > { %v691_v60 = vadd.f32 %v685_v56, %v661_v55  ;;  %v720_v39 = vld [vmem:[%s1077_s21] sm:$0xff] (%p1000_p5) }
 0x222   : > { %696 = vst [vmem:[%s1077_s21 + $0x20] sm:$0xff] %v690_v57  ;;  %v722_v61 = vld [vmem:[%s1077_s21 + $0x8] sm:$0xff] (%p1000_p5)  ;;  %721 = vst [vmem:[%s707_s7] sm:$0xff] (%p1000_p5), %v720_v39 }
 0x223   : > { %697 = vst [vmem:[%s1077_s21 + $0x28] sm:$0xff] %v691_v60  ;;  %723 = vst [vmem:[%s707_s7 + $0x8] sm:$0xff] (%p1000_p5), %v722_v61 }
 0x225   : > { %v724_v63 = vld [vmem:[%s1077_s21 + $0x10] sm:$0xff] }
 0x226   : > { %v726_v0 = vld [vmem:[%s1077_s21 + $0x18] sm:$0xff]  ;;  %725 = vst [vmem:[%s707_s7 + $0x20] sm:$0xff] %v724_v63 }
 0x227   : > { %727 = vst [vmem:[%s707_s7 + $0x28] sm:$0xff] %v726_v0 }
 0x229   : > { %v728_v1 = vld [vmem:[%s1077_s21 + $0x20] sm:$0xff] }
 0x22a   : > { %v730_v2 = vld [vmem:[%s1077_s21 + $0x28] sm:$0xff]  ;;  %729 = vst [vmem:[%s707_s7 + $0x40] sm:$0xff] %v728_v1 }
 0x22b   : > { %731 = vst [vmem:[%s707_s7 + $0x48] sm:$0xff] %v730_v2 }
 0x22c PF: > { %p13_p10 = scmp.ge.s32.totalorder %s988_s25, 4   ;;  %s1117_s21 = smov %s922_s22 }
 0x22d   : > { %s1118_s22 = smov %s998_s28  ;;  %s1119_s23 = smov %s988_s25 }
 0x22e   :  { %15 = sbr.rel (!%p13_p10) target bundleno = 2 (0x2), region = 125 }

</bundles_post_ra>
